<compile_context>
chip_gen: v7x
topology: tpu7x:2x2x1
jax: 0.10.0
libtpu: 0.0.40
codegen_flags: <defaults>
</compile_context>

<pallas_src>
import functools

import jax
import jax.numpy as jnp
from jax.experimental import pallas as pl
from jax.experimental.pallas import tpu as pltpu


def _round_up(x, m):
    return ((x + m - 1) // m) * m


def _actor_critic_kernel(action_dims, x_ref, w_sh_ref, w1_ref, w2_ref, bias_ref, out_ref):
    """Fused actor-critic forward, whole batch in one (gridless) tile.

    w1 = [w_actor_hidden | w_critic1]                       (h0, 2*h1)
    w2 = [[w_heads_concat, 0      , 0],                     (2*h1, P)  P = 128-padded
          [0             , w_crit2, 0]]
    bias_ref (8, P) f32: row0 = b_shared (padded), row1 = b1 (padded), row2 = b2.
    Output slab (B, P): [ head_0 probs | head_1 probs | ... | value | zeros ].
    """
    h0 = w_sh_ref.shape[1]
    h1x2 = w1_ref.shape[1]
    S = sum(action_dims)

    x = x_ref[...]
    b_sh = bias_ref[0:1, :h0]
    b1 = bias_ref[1:2, :h1x2]
    b2 = bias_ref[2:3, :]

    # shared_layers: Linear(state_size, h0) + ReLU   (bf16 MXU operands, f32 accumulate)
    shared = jnp.dot(x.astype(jnp.bfloat16), w_sh_ref[...],
                     preferred_element_type=jnp.float32) + b_sh
    shared = jnp.maximum(shared, 0.0)

    # actor_hidden + critic[0] fused: Linear(h0, 2*h1) + ReLU
    # hid[:, :h1] == actor features, hid[:, h1:] == critic hidden.
    hid = jnp.dot(shared.astype(jnp.bfloat16), w1_ref[...],
                  preferred_element_type=jnp.float32) + b1
    hid = jnp.maximum(hid, 0.0)

    # actor heads + critic value fused into one lane-dense matmul (N = P >= 128).
    # Block-zero structure of w2 keeps heads on actor features / value on critic features.
    raw = jnp.dot(hid.astype(jnp.bfloat16), w2_ref[...],
                  preferred_element_type=jnp.float32) + b2

    # Full-width masked per-head softmax (static lane masks from iota; no narrow slices).
    lane = jax.lax.broadcasted_iota(jnp.int32, raw.shape, 1)
    head_mask = lane < S                       # lanes belonging to any actor head
    masks = []
    off = 0
    for ad in action_dims:
        masks.append((lane >= off) & (lane < off + ad))
        off += ad

    neg_inf = jnp.float32(-jnp.inf)
    row_max = jnp.zeros_like(raw)
    for m in masks:
        mx = jnp.max(jnp.where(m, raw, neg_inf), axis=-1, keepdims=True)
        row_max = jnp.where(m, mx, row_max)

    # exp only where needed (value / padding lanes see exp(0) = 1, later overwritten).
    e = jnp.exp(jnp.where(head_mask, raw - row_max, 0.0))

    denom = jnp.ones_like(raw)
    for m in masks:
        s = jnp.sum(jnp.where(m, e, 0.0), axis=-1, keepdims=True)
        denom = jnp.where(m, s, denom)

    # Exact divide (not approx reciprocal): per-head probabilities sum to exactly 1.
    probs = e / denom

    # Head lanes -> probabilities; value + padding lanes pass raw through.
    # Single unmasked lane-dense store.
    out_ref[...] = jnp.where(head_mask, probs, raw)


def init_params(key, state_size, action_dims, hidden_layers):
    """Deterministic synthetic parameter init (shapes match the PyTorch module)."""
    assert len(hidden_layers) == 2, "mirrors the default [h0, h1] config"
    h0, h1 = hidden_layers

    def linear(key, fan_in, fan_out):
        kw, kb = jax.random.split(key)
        bound = 1.0 / jnp.sqrt(fan_in)
        w = jax.random.uniform(kw, (fan_in, fan_out), jnp.float32, -bound, bound)
        b = jax.random.uniform(kb, (1, fan_out), jnp.float32, -bound, bound)
        return w, b

    keys = jax.random.split(key, 4 + len(action_dims))
    params = {}
    params["shared"] = linear(keys[0], state_size, h0)               # shared_layers[0]
    params["actor_hidden"] = linear(keys[1], h0, h1)                 # actor_hidden[0]
    params["heads"] = [linear(keys[2 + i], h1, ad)                   # actor_heads[i][0]
                       for i, ad in enumerate(action_dims)]
    params["critic1"] = linear(keys[2 + len(action_dims)], h0, h1)   # critic[0]
    params["critic2"] = linear(keys[3 + len(action_dims)], h1, 1)    # critic[2]
    return params


def fuse_params(params, action_dims, mxu_dtype=jnp.bfloat16):
    """One-time host-side weight fusion / packing (amortized across forward calls)."""
    w_sh, b_sh = params["shared"]
    w_ah, b_ah = params["actor_hidden"]
    w_c1, b_c1 = params["critic1"]
    w_c2, b_c2 = params["critic2"]
    h0 = w_sh.shape[1]
    h1 = w_ah.shape[1]
    S = sum(action_dims)
    P = _round_up(S + 1, 128)   # lane-dense padded output width (heads + value)

    # actor_hidden + critic layer 1 -> one (h0, 2*h1) matmul.
    w1 = jnp.concatenate([w_ah, w_c1], axis=1)
    b1 = jnp.concatenate([b_ah, b_c1], axis=1)

    # all actor heads + critic value layer -> one block-structured (2*h1, P) matmul.
    w_heads = jnp.concatenate([w for w, _ in params["heads"]], axis=1)   # (h1, S)
    b_heads = jnp.concatenate([b for _, b in params["heads"]], axis=1)   # (1, S)
    w2 = jnp.zeros((2 * h1, P), jnp.float32)
    w2 = w2.at[:h1, :S].set(w_heads)
    w2 = w2.at[h1:, S:S + 1].set(w_c2)
    b2 = jnp.zeros((1, P), jnp.float32)
    b2 = b2.at[:, :S].set(b_heads)
    b2 = b2.at[:, S:S + 1].set(b_c2)

    # Pack all three biases into one zero-padded (8, P) f32 buffer -> single DMA.
    bias_pack = jnp.zeros((8, P), jnp.float32)
    bias_pack = bias_pack.at[0, :h0].set(b_sh[0])
    bias_pack = bias_pack.at[1, :2 * h1].set(b1[0])
    bias_pack = bias_pack.at[2, :].set(b2[0])

    return {
        "w_sh": w_sh.astype(mxu_dtype),
        "w1": w1.astype(mxu_dtype),
        "w2": w2.astype(mxu_dtype),
        "bias_pack": bias_pack,
    }


@functools.partial(jax.jit, static_argnames=("action_dims",))
def actor_critic_forward(state, fused, action_dims):
    B = state.shape[0]
    P = fused["w2"].shape[1]
    S = sum(action_dims)

    kernel = functools.partial(_actor_critic_kernel, action_dims)
    vmem_spec = pl.BlockSpec(memory_space=pltpu.MemorySpace.VMEM)

    out = pl.pallas_call(
        kernel,
        out_shape=jax.ShapeDtypeStruct((B, P), jnp.float32),
        in_specs=[vmem_spec] * 5,
        out_specs=vmem_spec,
        compiler_params=pltpu.CompilerParams(
            # Trivial here (<200 KB); explicit budget keeps headroom if the config scales
            # up toward v7x's smaller 64 MiB physical VMEM.
            vmem_limit_bytes=32 * 1024 * 1024,
        ),
    )(state, fused["w_sh"], fused["w1"], fused["w2"], fused["bias_pack"])

    # Split the lane-dense slab back into the module's outputs.
    action_probs = []
    off = 0
    for ad in action_dims:
        action_probs.append(out[:, off:off + ad])
        off += ad
    state_value = out[:, S:S + 1]
    return action_probs, state_value


def reference_forward(state, params, mm_dtype=jnp.float32):
    """Pure-JAX reference matching the PyTorch forward (mm_dtype selects MXU-operand precision)."""
    def mm(x, w):
        return jnp.dot(x.astype(mm_dtype), w.astype(mm_dtype),
                       preferred_element_type=jnp.float32)

    w_sh, b_sh = params["shared"]
    shared = jnp.maximum(mm(state, w_sh) + b_sh, 0.0)
    w_ah, b_ah = params["actor_hidden"]
    actor = jnp.maximum(mm(shared, w_ah) + b_ah, 0.0)
    probs = [jax.nn.softmax(mm(actor, w_h) + b_h, axis=1) for w_h, b_h in params["heads"]]
    w_c1, b_c1 = params["critic1"]
    w_c2, b_c2 = params["critic2"]
    c = jnp.maximum(mm(shared, w_c1) + b_c1, 0.0)
    value = mm(c, w_c2) + b_c2
    return probs, value


if __name__ == "__main__":
    # Small config consistent with the module: state vector in, multiple discrete heads out.
    batch = 16
    state_size = 16
    hidden_layers = [32, 32]
    action_dims = (4, 6)

    key = jax.random.PRNGKey(0)
    k_state, k_params = jax.random.split(key)
    state = jax.random.normal(k_state, (batch, state_size), jnp.float32)
    params = init_params(k_params, state_size, action_dims, hidden_layers)

    fused = fuse_params(params, action_dims)                       # one-time fusion/packing
    action_probs, state_value = actor_critic_forward(state, fused, action_dims)
    jax.block_until_ready(state_value)
    for p in action_probs:
        jax.block_until_ready(p)

    # 1) Tight check vs. a reference using the SAME precision policy (bf16 MXU operands,
    #    f32 accumulate/elementwise) -> verifies the kernel itself.
    ref_probs_bf16, ref_value_bf16 = reference_forward(state, params, mm_dtype=jnp.bfloat16)
    for got, ref in zip(action_probs, ref_probs_bf16):
        assert jnp.allclose(got, ref, atol=1e-4, rtol=1e-4), "head probs mismatch (bf16 ref)"
    assert jnp.allclose(state_value, ref_value_bf16, atol=1e-4, rtol=1e-4), \
        "value mismatch (bf16 ref)"

    # 2) Loose check vs. the pure-f32 reference -> verifies bf16 operands preserve semantics.
    ref_probs_f32, ref_value_f32 = reference_forward(state, params, mm_dtype=jnp.float32)
    for got, ref in zip(action_probs, ref_probs_f32):
        assert jnp.allclose(got, ref, atol=2e-2, rtol=2e-2), "head probs mismatch (f32 ref)"
    assert jnp.allclose(state_value, ref_value_f32, atol=2e-2, rtol=2e-2), \
        "value mismatch (f32 ref)"

    # 3) Exact-divide softmax: per-head probabilities must sum to 1.
    for got in action_probs:
        assert jnp.allclose(jnp.sum(got, axis=1), 1.0, atol=1e-5), "probs do not sum to 1"

    print("KERNEL_OK")
</pallas_src>

<mosaic_0001>
module attributes {stable_mosaic.version = 11 : i64} {
  func.func @_actor_critic_kernel(%arg0: memref<16x16xf32, #tpu.memory_space<vmem>>, %arg1: memref<16x32xbf16, #tpu.memory_space<vmem>>, %arg2: memref<32x64xbf16, #tpu.memory_space<vmem>>, %arg3: memref<64x128xbf16, #tpu.memory_space<vmem>>, %arg4: memref<8x128xf32, #tpu.memory_space<vmem>>, %arg5: memref<16x128xf32, #tpu.memory_space<vmem>>) attributes {dimension_semantics = [], scalar_prefetch = 0 : i64, scratch_operands = 0 : i64, tpu.core_type = #tpu.core_type<tc>} {
    %c0 = arith.constant 0 : index
    %c0_0 = arith.constant 0 : index
    %0 = vector.load %arg0[%c0, %c0_0] : memref<16x16xf32, #tpu.memory_space<vmem>>, vector<16x16xf32>
    %c0_1 = arith.constant 0 : index
    %c0_2 = arith.constant 0 : index
    %1 = vector.load %arg4[%c0_1, %c0_2] : memref<8x128xf32, #tpu.memory_space<vmem>>, vector<1x32xf32>
    %c1 = arith.constant 1 : index
    %c0_3 = arith.constant 0 : index
    %2 = vector.load %arg4[%c1, %c0_3] : memref<8x128xf32, #tpu.memory_space<vmem>>, vector<1x64xf32>
    %c2 = arith.constant 2 : index
    %c0_4 = arith.constant 0 : index
    %3 = vector.load %arg4[%c2, %c0_4] : memref<8x128xf32, #tpu.memory_space<vmem>>, vector<1x128xf32>
    %4 = arith.truncf %0 : vector<16x16xf32> to vector<16x16xbf16>
    %c0_5 = arith.constant 0 : index
    %c0_6 = arith.constant 0 : index
    %5 = vector.load %arg1[%c0_5, %c0_6] : memref<16x32xbf16, #tpu.memory_space<vmem>>, vector<16x32xbf16>
    %cst = arith.constant dense<0.000000e+00> : vector<16x32xf32>
    %6 = tpu.matmul %4, %5, %cst {dimension_numbers = #tpu.dot_dimension_numbers<[1], [0], [0], [1], [0, 0, 1, 1], [], []>} : vector<16x16xbf16>, vector<16x32xbf16>, vector<16x32xf32> -> vector<16x32xf32>
    %7 = vector.broadcast %1 : vector<1x32xf32> to vector<16x32xf32>
    %8 = arith.addf %6, %7 : vector<16x32xf32>
    %cst_7 = arith.constant 0.000000e+00 : f32
    %9 = vector.broadcast %cst_7 : f32 to vector<16x32xf32>
    %10 = arith.maximumf %8, %9 : vector<16x32xf32>
    %11 = arith.truncf %10 : vector<16x32xf32> to vector<16x32xbf16>
    %c0_8 = arith.constant 0 : index
    %c0_9 = arith.constant 0 : index
    %12 = vector.load %arg2[%c0_8, %c0_9] : memref<32x64xbf16, #tpu.memory_space<vmem>>, vector<32x64xbf16>
    %cst_10 = arith.constant dense<0.000000e+00> : vector<16x64xf32>
    %13 = tpu.matmul %11, %12, %cst_10 {dimension_numbers = #tpu.dot_dimension_numbers<[1], [0], [0], [1], [0, 0, 1, 1], [], []>} : vector<16x32xbf16>, vector<32x64xbf16>, vector<16x64xf32> -> vector<16x64xf32>
    %14 = vector.broadcast %2 : vector<1x64xf32> to vector<16x64xf32>
    %15 = arith.addf %13, %14 : vector<16x64xf32>
    %cst_11 = arith.constant 0.000000e+00 : f32
    %16 = vector.broadcast %cst_11 : f32 to vector<16x64xf32>
    %17 = arith.maximumf %15, %16 : vector<16x64xf32>
    %18 = arith.truncf %17 : vector<16x64xf32> to vector<16x64xbf16>
    %c0_12 = arith.constant 0 : index
    %c0_13 = arith.constant 0 : index
    %19 = vector.load %arg3[%c0_12, %c0_13] : memref<64x128xbf16, #tpu.memory_space<vmem>>, vector<64x128xbf16>
    %cst_14 = arith.constant dense<0.000000e+00> : vector<16x128xf32>
    %20 = tpu.matmul %18, %19, %cst_14 {dimension_numbers = #tpu.dot_dimension_numbers<[1], [0], [0], [1], [0, 0, 1, 1], [], []>} : vector<16x64xbf16>, vector<64x128xbf16>, vector<16x128xf32> -> vector<16x128xf32>
    %21 = vector.broadcast %3 : vector<1x128xf32> to vector<16x128xf32>
    %22 = arith.addf %20, %21 : vector<16x128xf32>
    %23 = tpu.iota {dimensions = array<i32: 1>} : vector<16x128xi32>
    %c10_i32 = arith.constant 10 : i32
    %24 = vector.broadcast %c10_i32 : i32 to vector<16x128xi32>
    %25 = arith.cmpi slt, %23, %24 : vector<16x128xi32>
    %c0_i32 = arith.constant 0 : i32
    %26 = vector.broadcast %c0_i32 : i32 to vector<16x128xi32>
    %27 = arith.cmpi sge, %23, %26 : vector<16x128xi32>
    %c4_i32 = arith.constant 4 : i32
    %28 = vector.broadcast %c4_i32 : i32 to vector<16x128xi32>
    %29 = arith.cmpi slt, %23, %28 : vector<16x128xi32>
    %30 = arith.andi %27, %29 : vector<16x128xi1>
    %c4_i32_15 = arith.constant 4 : i32
    %31 = vector.broadcast %c4_i32_15 : i32 to vector<16x128xi32>
    %32 = arith.cmpi sge, %23, %31 : vector<16x128xi32>
    %c10_i32_16 = arith.constant 10 : i32
    %33 = vector.broadcast %c10_i32_16 : i32 to vector<16x128xi32>
    %34 = arith.cmpi slt, %23, %33 : vector<16x128xi32>
    %35 = arith.andi %32, %34 : vector<16x128xi1>
    %cst_17 = arith.constant 0.000000e+00 : f32
    %36 = vector.broadcast %cst_17 : f32 to vector<16x128xf32>
    %cst_18 = arith.constant 0xFF800000 : f32
    %37 = vector.broadcast %cst_18 : f32 to vector<16x128xf32>
    %38 = arith.select %30, %22, %37 : vector<16x128xi1>, vector<16x128xf32>
    %cst_19 = arith.constant dense<0xFF800000> : vector<16xf32>
    %39 = vector.multi_reduction <maximumf>, %38, %cst_19 [1] : vector<16x128xf32> to vector<16xf32>
    %40 = vector.shape_cast %39 : vector<16xf32> to vector<16x1xf32>
    %41 = vector.shape_cast %40 : vector<16x1xf32> to vector<16x1xf32>
    %42 = vector.broadcast %41 : vector<16x1xf32> to vector<16x128xf32>
    %43 = arith.select %30, %42, %36 : vector<16x128xi1>, vector<16x128xf32>
    %cst_20 = arith.constant 0xFF800000 : f32
    %44 = vector.broadcast %cst_20 : f32 to vector<16x128xf32>
    %45 = arith.select %35, %22, %44 : vector<16x128xi1>, vector<16x128xf32>
    %cst_21 = arith.constant dense<0xFF800000> : vector<16xf32>
    %46 = vector.multi_reduction <maximumf>, %45, %cst_21 [1] : vector<16x128xf32> to vector<16xf32>
    %47 = vector.shape_cast %46 : vector<16xf32> to vector<16x1xf32>
    %48 = vector.shape_cast %47 : vector<16x1xf32> to vector<16x1xf32>
    %49 = vector.broadcast %48 : vector<16x1xf32> to vector<16x128xf32>
    %50 = arith.select %35, %49, %43 : vector<16x128xi1>, vector<16x128xf32>
    %51 = arith.subf %22, %50 : vector<16x128xf32>
    %cst_22 = arith.constant 0.000000e+00 : f32
    %52 = vector.broadcast %cst_22 : f32 to vector<16x128xf32>
    %53 = arith.select %25, %51, %52 : vector<16x128xi1>, vector<16x128xf32>
    %54 = math.exp %53 : vector<16x128xf32>
    %cst_23 = arith.constant 1.000000e+00 : f32
    %55 = vector.broadcast %cst_23 : f32 to vector<16x128xf32>
    %cst_24 = arith.constant 0.000000e+00 : f32
    %56 = vector.broadcast %cst_24 : f32 to vector<16x128xf32>
    %57 = arith.select %30, %54, %56 : vector<16x128xi1>, vector<16x128xf32>
    %cst_25 = arith.constant dense<0.000000e+00> : vector<16xf32>
    %58 = vector.multi_reduction <add>, %57, %cst_25 [1] : vector<16x128xf32> to vector<16xf32>
    %59 = vector.shape_cast %58 : vector<16xf32> to vector<16x1xf32>
    %60 = vector.shape_cast %59 : vector<16x1xf32> to vector<16x1xf32>
    %61 = vector.broadcast %60 : vector<16x1xf32> to vector<16x128xf32>
    %62 = arith.select %30, %61, %55 : vector<16x128xi1>, vector<16x128xf32>
    %cst_26 = arith.constant 0.000000e+00 : f32
    %63 = vector.broadcast %cst_26 : f32 to vector<16x128xf32>
    %64 = arith.select %35, %54, %63 : vector<16x128xi1>, vector<16x128xf32>
    %cst_27 = arith.constant dense<0.000000e+00> : vector<16xf32>
    %65 = vector.multi_reduction <add>, %64, %cst_27 [1] : vector<16x128xf32> to vector<16xf32>
    %66 = vector.shape_cast %65 : vector<16xf32> to vector<16x1xf32>
    %67 = vector.shape_cast %66 : vector<16x1xf32> to vector<16x1xf32>
    %68 = vector.broadcast %67 : vector<16x1xf32> to vector<16x128xf32>
    %69 = arith.select %35, %68, %62 : vector<16x128xi1>, vector<16x128xf32>
    %70 = arith.divf %54, %69 : vector<16x128xf32>
    %71 = arith.select %25, %70, %22 : vector<16x128xi1>, vector<16x128xf32>
    %c0_28 = arith.constant 0 : index
    %c0_29 = arith.constant 0 : index
    %72 = vector.load %arg5[%c0_28, %c0_29] : memref<16x128xf32, #tpu.memory_space<vmem>>, vector<16x128xf32>
    tpu.vector_store %arg5[%c0_28, %c0_29], %71 {strides = array<i32>} : memref<16x128xf32, #tpu.memory_space<vmem>>, vector<16x128xf32>,
    return
  }
}

</mosaic_0001>

<bundles_post_ra>
// kernel: actor_critic_forward.1
= control target key start
LH: loop header
LB: loop body
LE: loop exit
PB: predicated region body
PF: predicated region fallthrough
CT: control target
= control target key end

     0   :  { %10 = vsyncpa [#allocation3], 0  ;;  %s674_s0 = inlined_call_operand.hbm [shape: f32[16,16], index: 0, kind: input, shape index: {}]   ;;  %s675_s1 = inlined_call_operand.vmem [shape: bf16[16,32], index: 1, kind: input, shape index: {}]   ;;  %s676_s2 = inlined_call_operand.hbm [shape: bf16[32,64], index: 2, kind: input, shape index: {}]   ;;  %s677_s3 = inlined_call_operand.hbm [shape: bf16[64,128], index: 3, kind: input, shape index: {}]   ;;  %s678_s4 = inlined_call_operand.hbm [shape: f32[8,128], index: 4, kind: input, shape index: {}]   ;;  %s679_s5 = inlined_call_operand.vmem [shape: f32[16,128], index: 5, kind: output, shape index: {}]  }
   0x1   :  { %11 = vsyncpa [#allocation5], 0 }
   0x2   :  { %12 = vsyncpa [#allocation8], 0  ;;  %s520_s18 = smov [#allocation4]   ;;  %s426_s22 = scalar_lea.hbm %s676_s2, 256 }
   0x3   :  { %s32_s19 = sshll.u32 %s520_s18, 4  ;;  %p427_p0 = scmp.ne.s32.totalorder %s676_s2, %s426_s22  ;;  %s33_s19 = int_to_ptr.vmem [resolvable:$true] %s32_s19 }
   0x4   :  { %p430_p1 = scmp.lt.u32.totalorder %s426_s22, %s676_s2 }
   0x6   :  { %p432_p2 = pnand %p430_p1, %p427_p0 }
   0x8   :  { %435 = shalt.err (!%p432_p2)
}
   0x9   :  { %s436_s27 = scalar_lea.vmem %s33_s19, 256  ;;  %p441_p4 = scmp.lt.s32.totalorder %s33_s19, %s33_s19 }
   0xa   :  { %p437_p3 = scmp.ne.s32.totalorder %s33_s19, %s436_s27  ;;  %p442_p5 = scmp.lt.s32.totalorder %s436_s27, %s436_s27 }
   0xc   :  { %p443_p6 = por %p442_p5, %p441_p4 }
   0xe   :  { %p444_p7 = pnand %p443_p6, %p437_p3 }
  0x10   :  { %447 = shalt.err (!%p444_p7)
}
  0x11   :  { %s521_s28 = smov 64   ;;  %s522_s29 = smov 4  }
  0x12   :  { %38 = dma.hbm_to_vmem [thread:$0]  %s676_s2, 256, %s33_s19, [#allocation5], %s521_s28, %s521_s28, %s522_s29  }
  0x13   :  { %s523_s7 = smov [#allocation2]   ;;  %s448_s11 = scalar_lea.hbm %s674_s0, 256 }
  0x14   :  { %s18_s8 = sshll.u32 %s523_s7, 4  ;;  %p449_p8 = scmp.ne.s32.totalorder %s674_s0, %s448_s11  ;;  %s19_s8 = int_to_ptr.vmem [resolvable:$true] %s18_s8 }
  0x15   :  { %p452_p9 = scmp.lt.u32.totalorder %s448_s11, %s674_s0 }
  0x17   :  { %p454_p10 = pnand %p452_p9, %p449_p8 }
  0x19   :  { %457 = shalt.err (!%p454_p10)
}
  0x1a   :  { %s458_s16 = scalar_lea.vmem %s19_s8, 256  ;;  %p463_p12 = scmp.lt.s32.totalorder %s19_s8, %s19_s8 }
  0x1b   :  { %p459_p11 = scmp.ne.s32.totalorder %s19_s8, %s458_s16  ;;  %p464_p13 = scmp.lt.s32.totalorder %s458_s16, %s458_s16 }
  0x1d   :  { %p465_p0 = por %p464_p13, %p463_p12 }
  0x1f   :  { %p466_p1 = pnand %p465_p0, %p459_p11 }
  0x21   :  { %469 = shalt.err (!%p466_p1)
}
  0x22   :  { %s524_s2 = smov 128   ;;  %s525_s17 = smov 8  }
  0x23   :  { %24 = dma.hbm_to_vmem [thread:$0]  %s674_s0, 256, %s19_s8, [#allocation3], %s524_s2, %s524_s2, %s525_s17  }
  0x24   :  { %s526_s20 = smov [#allocation6]   ;;  %s527_s22 = smov [#allocation7]  }
  0x25   :  { %s44_s21 = sshll.u32 %s526_s20, 4  ;;  %s57_s23 = sshll.u32 %s527_s22, 4  ;;  %s45_s21 = int_to_ptr.vmem [resolvable:$true] %s44_s21  ;;  %s58_s23 = int_to_ptr.vmem [resolvable:$true] %s57_s23 }
  0x26   :  { %s470_s26 = scalar_lea.hbm %s677_s3, 512 }
  0x27   :  { %p471_p2 = scmp.ne.s32.totalorder %s677_s3, %s470_s26  ;;  %p474_p3 = scmp.lt.u32.totalorder %s470_s26, %s677_s3 }
  0x29   :  { %p476_p4 = pnand %p474_p3, %p471_p2 }
  0x2b   :  { %479 = shalt.err (!%p476_p4)
}
  0x2c   :  { %s480_s0 = scalar_lea.vmem %s45_s21, 512  ;;  %p485_p6 = scmp.lt.s32.totalorder %s45_s21, %s45_s21 }
  0x2d   :  { %p481_p5 = scmp.ne.s32.totalorder %s45_s21, %s480_s0  ;;  %p486_p7 = scmp.lt.s32.totalorder %s480_s0, %s480_s0 }
  0x2f   :  { %p487_p8 = por %p486_p7, %p485_p6 }
  0x31   :  { %p488_p9 = pnand %p487_p8, %p481_p5 }
  0x33   :  { %491 = shalt.err (!%p488_p9)
}
  0x34   :  { %50 = dma.hbm_to_vmem [thread:$0]  %s677_s3, 512, %s45_s21, [#allocation5], %s521_s28, %s521_s28, %s522_s29  }
  0x35   :  { %s492_s12 = scalar_lea.hbm %s678_s4, 128 }
  0x36   :  { %p493_p10 = scmp.ne.s32.totalorder %s678_s4, %s492_s12  ;;  %p496_p11 = scmp.lt.u32.totalorder %s492_s12, %s678_s4 }
  0x38   :  { %p498_p12 = pnand %p496_p11, %p493_p10 }
  0x3a   :  { %501 = shalt.err (!%p498_p12)
}
  0x3b   :  { %s502_s2 = scalar_lea.vmem %s58_s23, 128  ;;  %p507_p0 = scmp.lt.s32.totalorder %s58_s23, %s58_s23 }
  0x3c   :  { %p503_p13 = scmp.ne.s32.totalorder %s58_s23, %s502_s2  ;;  %p508_p1 = scmp.lt.s32.totalorder %s502_s2, %s502_s2 }
  0x3e   :  { %p509_p2 = por %p508_p1, %p507_p0 }
  0x40   :  { %p510_p3 = pnand %p509_p2, %p503_p13 }
  0x42   :  { %513 = shalt.err (!%p510_p3)
}
  0x43   :  { %60 = dma.hbm_to_vmem [thread:$0]  %s678_s4, 128, %s58_s23, [#allocation8]  }
  0x44   :  { %514 = dma.done.wait [#allocation3], 256  }
  0x45   :  { %515 = vsyncadd [#allocation3], 4294967040 }
  0x46   :  { %516 = dma.done.wait [#allocation5], 768  }
  0x47   :  { %517 = vsyncadd [#allocation5], 4294966528 }
  0x48   :  { %518 = dma.done.wait [#allocation8], 128  }
  0x49   :  { %519 = vsyncadd [#allocation8], 4294967168  ;;  %v528_v0 = vmov 0.0   ;;  %vm529_vm0 = vmmov 0   ;;  %v411_v1 = vld [vmem:[%s675_s1] sm:$0xff]   ;;  %v74_v2 = vld [vmem:[#allocation2] sm:$0xff]  ;;  %v289_v31 = vlaneseq }
  0x4a   :  { %375 = vmatprep.subr.bf16.mxu1 %v528_v0  ;;  %377 = vmatprep.mubr.msk.bf16.mxu1 %vm529_vm0, %v528_v0  ;;  %v75_v3 = vld [vmem:[#allocation2 + $0x8] sm:$0xff]  ;;  %vm92_vm1 = vcmask 130048   ;;  %v412_v5 = vld [vmem:[#allocation4] sm:$0xff]   ;;  %v413_v6 = vld [vmem:[#allocation4 + $0x8] sm:$0xff]   ;;  %vm160_vm2 = vcmask 261120   ;;  %vm244_vm3 = vcmask 523264  }
  0x4b   :  { %389 = vmatprep.subr.bf16.mxu0 %v528_v0  ;;  %397 = vmatprep.mubr.msk.bf16.mxu0 %vm529_vm0, %v528_v0  ;;  %v79_v4 = vpack.c.bf16 %v75_v3, %v74_v2  ;;  %v414_v7 = vld [vmem:[#allocation6] sm:$0xff]   ;;  %v415_v8 = vld [vmem:[#allocation6 + $0x8] sm:$0xff]   ;;  %v416_v19 = vld [vmem:[#allocation6 + $0x10] sm:$0xff]   ;;  %v617_v32 = vand.u32 127, %v289_v31 }
  0x4c   :  { %376 = vmatpush3.bf16.msra.mxu1 %v411_v1  ;;  %390 = vmatpush3.bf16.msra.mxu0 %v414_v7  ;;  %v352_v9 = vld [vmem:[#allocation7] ss:$0 sm:$0xff]  ;;  %v417_v20 = vld [vmem:[#allocation6 + $0x18] sm:$0xff]   ;;  %v355_v21 = vld [vmem:[#allocation7 + $0x1] ss:$0 sm:$0xff] }
  0x4d   :  { %381 = vmatprep.subr.bf16.mxu1 %v528_v0  ;;  %391 = vmatprep.subr.bf16.mxu0 %v528_v0  ;;  %vm291_vm4 = vcmp.lt.s32.totalorder %v617_v32, 10  ;;  %vm295_vm5 = vcmp.ge.s32.totalorder %v617_v32, 4  ;;  %v359_v33 = vld [vmem:[#allocation7 + $0x2] ss:$0 sm:$0xff]  ;;  %vm293_vm7 = vcmp.lt.s32.totalorder %v617_v32, 4 }
  0x4e   :  { %vm623_vm6 = vmand %vm295_vm5, %vm291_vm4 }
  0x4f   :  { %378 = vmatmul.mubr.msk.bf16.vlgmr.msra.gmra.mrb[0].mxu1 %vm92_vm1, %v79_v4 }
  0x50   :  { %385 = vmatprep.mubr.msk.bf16.mxu1 %vm529_vm0, %v528_v0  ;;  %382 = vmatpush3.bf16.msra.mxu1 %v412_v5 }
  0x51   :  { %383 = vmatprep.subr.bf16.mxu1 %v528_v0  ;;  %392 = vmatpush3.bf16.msra.mxu0 %v415_v8 }
  0x52   :  { %393 = vmatprep.subr.bf16.mxu0 %v528_v0 }
  0x54   :  { %384 = vmatpush3.bf16.msra.mxu1 %v413_v6 }
  0x55   :  { %394 = vmatpush3.bf16.msra.mxu0 %v416_v19 }
  0x56   :  { %395 = vmatprep.subr.bf16.mxu0 %v528_v0 }
  0x59   :  { %396 = vmatpush3.bf16.msra.mxu0 %v417_v20 }
 0x122   :  { %v130_v10 = vpop.f32.mrb[0].mxu1 }
 0x123   :  { %v131_v11 = vadd.f32 %v352_v9, %v130_v10  ;;  %v379_v12 = vpop.f32.mrb[1].mxu1 }
 0x124   :  { %v133_v13 = vpop.f32.mrb[2].mxu1 }
 0x125   :  { %v134_v14 = vadd.f32 %v352_v9, %v133_v13  ;;  %v380_v15 = vpop.f32.mrb[3].mxu1  ;;  %v137_v16 = vmax.f32 %v131_v11, 0.0 }
 0x127   :  { %v138_v17 = vmax.f32 %v134_v14, 0.0 }
 0x129   :  { %v139_v18 = vpack.c.bf16 %v138_v17, %v137_v16 }
 0x12b   :  { %386 = vmatmul.mubr.msk.bf16.vlgmr.msra.gmra.mrb[4].mxu1 %vm160_vm2, %v139_v18 }
 0x1fe   :  { %v198_v22 = vpop.f32.mrb[4].mxu1 }
 0x1ff   :  { %v199_v23 = vadd.f32 %v355_v21, %v198_v22  ;;  %v387_v24 = vpop.f32.mrb[5].mxu1 }
 0x200   :  { %v201_v25 = vpop.f32.mrb[6].mxu1 }
 0x201   :  { %v202_v26 = vadd.f32 %v355_v21, %v201_v25  ;;  %v388_v27 = vpop.f32.mrb[7].mxu1  ;;  %v205_v28 = vmax.f32 %v199_v23, 0.0 }
 0x203   :  { %v206_v29 = vmax.f32 %v202_v26, 0.0 }
 0x205   :  { %v207_v30 = vpack.c.bf16 %v206_v29, %v205_v28 }
 0x207   :  { %398 = vmatmul.mubr.msk.bf16.vlgmr.msra.gmra.mrb[0].mxu0 %vm244_vm3, %v207_v30 }
 0x2da   :  { %v282_v34 = vpop.f32.mrb[0].mxu0 }
 0x2db   :  { %v283_v36 = vadd.f32 %v359_v33, %v282_v34  ;;  %v399_v37 = vpop.f32.mrb[1].mxu0 }
 0x2dc   :  { %v285_v38 = vpop.f32.mrb[2].mxu0 }
 0x2dd   :  { %v286_v39 = vadd.f32 %v359_v33, %v285_v38  ;;  %v400_v40 = vpop.f32.mrb[3].mxu0  ;;  %v305_v41 = vsel %vm623_vm6, %v283_v36, -inf  ;;  %v297_v42 = vsel %vm293_vm7, %v283_v36, -inf }
 0x2de   :  { %307 = vmax.xlane.f32.xlu1 %v305_v41  ;;  %299 = vmax.xlane.f32.xlu0 %v297_v42 }
 0x2df   :  { %v306_v43 = vsel %vm623_vm6, %v286_v39, -inf  ;;  %v298_v44 = vsel %vm293_vm7, %v286_v39, -inf }
 0x2e2   :  { %309 = vmax.xlane.f32.xlu1 %v306_v43  ;;  %301 = vmax.xlane.f32.xlu0 %v298_v44 }
 0x36b   :  { %v308_v45 = vpop.xlane.xlu1 %307  ;;  %v300_v46 = vpop.xlane.xlu0 %299 }
 0x36c   :  { %v303_v47 = vsel %vm293_vm7, %v300_v46, 0.0 }
 0x36d   :  { %v311_v48 = vsel %vm623_vm6, %v308_v45, %v303_v47 }
 0x36e   :  { %v313_v49 = vsub.f32 %v283_v36, %v311_v48 }
 0x36f   :  { %v310_v50 = vpop.xlane.xlu1 %309  ;;  %v302_v51 = vpop.xlane.xlu0 %301 }
 0x370   :  { %v315_v52 = vsel %vm291_vm4, %v313_v49, 0.0  ;;  %v304_v53 = vsel %vm293_vm7, %v302_v51, 0.0 }
 0x371   :  { %v317_v54 = vmul.f32 1.442695, %v315_v52  ;;  %v312_v55 = vsel %vm623_vm6, %v310_v50, %v304_v53 }
 0x372   :  { %v314_v56 = vsub.f32 %v286_v39, %v312_v55 }
 0x373   :  { %418 = vpow2.f32 %v317_v54 }
 0x374   :  { %v316_v57 = vsel %vm291_vm4, %v314_v56, 0.0 }
 0x375   :  { %v319_v58 = vmul.f32 1.442695, %v316_v57 }
 0x377   :  { %420 = vpow2.f32 %v319_v58 }
 0x37d   :  { %v419_v59 = vpop.eup %418 }
 0x37e   :  { %v321_v60 = vsel %vm293_vm7, %v419_v59, 0.0  ;;  %v329_v62 = vsel %vm623_vm6, %v419_v59, 0.0 }
 0x37f   :  { %323 = vadd.xlane.f32.xlu0 %v321_v60 }
 0x381   :  { %v421_v61 = vpop.eup %420 }
 0x382   :  { %v322_v63 = vsel %vm293_vm7, %v421_v61, 0.0  ;;  %v330_v0 = vsel %vm623_vm6, %v421_v61, 0.0 }
 0x383   :  { %331 = vadd.xlane.f32.xlu0 %v329_v62  ;;  %325 = vadd.xlane.f32.xlu1 %v322_v63 }
 0x387   :  { %333 = vadd.xlane.f32.xlu1 %v330_v0 }
 0x40c   :  { %v324_v1 = vpop.xlane.xlu0 %323 }
 0x40d   :  { %v327_v2 = vsel %vm293_vm7, %v324_v1, 1.0 }
 0x410   :  { %v326_v3 = vpop.xlane.xlu1 %325  ;;  %v332_v4 = vpop.xlane.xlu0 %331 }
 0x411   :  { %v335_v5 = vsel %vm623_vm6, %v332_v4, %v327_v2  ;;  %v328_v6 = vsel %vm293_vm7, %v326_v3, 1.0 }
 0x412   :  { %422 = vrcp.f32 %v335_v5 }
 0x414   :  { %v334_v7 = vpop.xlane.xlu1 %333 }
 0x415   :  { %v336_v8 = vsel %vm623_vm6, %v334_v7, %v328_v6 }
 0x416   :  { %424 = vrcp.f32 %v336_v8 }
 0x41c   :  { %v423_v9 = vpop.eup %422 }
 0x41d   :  { %v338_v10 = vmul.f32 %v423_v9, %v419_v59 }
 0x41f   :  { %v341_v11 = vsel %vm291_vm4, %v338_v10, %v283_v36 }
 0x420   :  { %v425_v12 = vpop.eup %424  ;;  %343 = vst [vmem:[%s679_s5] sm:$0xff] %v341_v11 }
 0x421   :  { %v340_v13 = vmul.f32 %v425_v12, %v421_v61 }
 0x423   :  { %v342_v14 = vsel %vm291_vm4, %v340_v13, %v286_v39 }
 0x424   :  { %344 = vst [vmem:[%s679_s5 + $0x8] sm:$0xff] %v342_v14 }
 0x425   :  { %349 = vsyncpa [#allocation3], 1 }
 0x426   :  { %350 = vsyncpa [#allocation5], 1 }
 0x427   :  { %351 = vsyncpa [#allocation8], 1 }

</bundles_post_ra>
